<compile_context>
chip_gen: v6e
topology: v6e:2x2x1
jax: 0.10.0
libtpu: 0.0.40
codegen_flags: <defaults>
</compile_context>

<pallas_src>
import math

import jax
import jax.numpy as jnp
from jax import lax
from jax.experimental import pallas as pl
from jax.experimental.pallas import tpu as pltpu

PAD_ID = -1          # module default pad_id=-1
NEG_BIAS = -1e30     # bias for padded label rows -> excluded from logsumexp


def _labeler_logprob_kernel(x_ref, y_ref, ewt_ref, bt_ref, o_ref):
    # x_ref:   (T_pad, TB) int32   token ids  (time on sublanes, sequences on lanes)
    # y_ref:   (T_pad, TB) int32   gold labels (PAD_ID = padding)
    # ewt_ref: (L_pad, V_pad) bf16 (Embed @ W)^T, zero-padded rows/cols
    # bt_ref:  (L_pad, 1)  f32     bias^T, padded rows = NEG_BIAS
    # o_ref:   (1, TB)     f32     per-sequence log-prob
    T_pad, TB = x_ref.shape
    L_pad, V_pad = ewt_ref.shape
    N = T_pad * TB                                                # tokens on lanes

    # ---- fused embedding+projection: logits^T = EW^T @ onehot(x)^T ----------
    ids = x_ref[...].reshape(1, N)                                # n = t*TB + b
    v_iota = lax.broadcasted_iota(jnp.int32, (V_pad, N), 0)
    onehot_x = (ids == v_iota).astype(ewt_ref.dtype)              # (V_pad, N) bf16
    logits = jnp.dot(ewt_ref[...], onehot_x,
                     preferred_element_type=jnp.float32)          # (L_pad, N) f32
    logits = logits + bt_ref[...]                                 # lane-broadcast bias

    # ---- numerically stable log-sum-exp over labels (sublane axis) ----------
    # padded label rows carry bias = -1e30 -> never the max, exp underflows to 0
    m = jnp.max(logits, axis=0, keepdims=True)                    # (1, N)
    lse = m + jnp.log(jnp.sum(jnp.exp(logits - m), axis=0, keepdims=True))

    # ---- gather logits at the gold label (no full log-softmax tensor) -------
    yid = y_ref[...].reshape(1, N)                                # (1, N)
    valid = yid != PAD_ID
    y_safe = jnp.where(valid, yid, 0)
    l_iota = lax.broadcasted_iota(jnp.int32, (L_pad, N), 0)
    logit_at_y = jnp.sum(jnp.where(y_safe == l_iota, logits, 0.0),
                         axis=0, keepdims=True)                   # (1, N)

    tok_lp = jnp.where(valid, logit_at_y - lse, 0.0)              # (1, N)

    # ---- per-sequence sum over time: n = t*TB + b -> sublane reduce ----------
    o_ref[...] = jnp.sum(tok_lp.reshape(T_pad, TB),
                         axis=0, keepdims=True)                   # (1, TB) lane-dense


def _pick_seq_block(B, seq_block):
    # lane-dense minimum 128; keep >= 2 grid steps for large B so v7x's two
    # TensorCores both get work (irrelevant on 1-TC v5e/v6e).
    tb = min(seq_block, max(128, -(-B // 2)))
    return -(-tb // 128) * 128


def labeler_log_prob(x, y, embed_table, w, b, *, seq_block=512):
    """x: [B, T] int32 token ids, y: [B, T] int32 labels (pad=-1),
    embed_table: [V, D], w: [D, L], b: [L]  ->  per-sequence log-prob [B] f32."""
    B, T = x.shape
    V, D = embed_table.shape
    L = w.shape[-1]

    TB = _pick_seq_block(B, seq_block)       # sequences per grid step
    G = -(-B // TB)                          # grid size (ceil-div)
    B_pad = G * TB
    T_pad = -(-T // 8) * 8                   # time padded to a sublane multiple
    L_pad = -(-L // 8) * 8                   # labels padded to a sublane multiple
    V_pad = -(-V // 8) * 8                   # vocab padded to a sublane multiple

    # Pad batch/time. Dummy positions get y = PAD -> contribute exactly 0.
    x_p = jnp.pad(x.astype(jnp.int32), ((0, B_pad - B), (0, T_pad - T)))
    y_p = jnp.pad(y.astype(jnp.int32), ((0, B_pad - B), (0, T_pad - T)),
                  constant_values=PAD_ID)

    # Layout: per grid step a (T_pad, TB) tile with time on sublanes, sequences
    # on lanes (exactly (8,128)-tiled, unmasked loads, contiguous DMA rows).
    x_t = x_p.T.reshape(T_pad, G, TB).transpose(1, 0, 2).reshape(G * T_pad, TB)
    y_t = y_p.T.reshape(T_pad, G, TB).transpose(1, 0, 2).reshape(G * T_pad, TB)

    # Fuse E @ W once in f32, then bf16; transpose to (L, V) and pad.
    ew = embed_table.astype(jnp.float32) @ w.astype(jnp.float32)          # (V, L)
    ewt = jnp.zeros((L_pad, V_pad), jnp.float32).at[:L, :V].set(ew.T)
    ewt = ewt.astype(jnp.bfloat16)
    bt = jnp.full((L_pad, 1), NEG_BIAS, jnp.float32).at[:L, 0].set(
        b.astype(jnp.float32))

    # Per-step VMEM footprint is tiny (ids 2*T_pad*TB*4 B + a few-KB table +
    # lane-dense intermediates), far under default scoped limits on v5e/v6e/v7x.
    out = pl.pallas_call(
        _labeler_logprob_kernel,
        out_shape=jax.ShapeDtypeStruct((1, B_pad), jnp.float32),
        grid_spec=pltpu.PrefetchScalarGridSpec(
            num_scalar_prefetch=0,
            grid=(G,),
            in_specs=[
                pl.BlockSpec((T_pad, TB), lambda i: (i, 0)),     # token ids
                pl.BlockSpec((T_pad, TB), lambda i: (i, 0)),     # label ids
                pl.BlockSpec((L_pad, V_pad), lambda i: (0, 0)),  # (E@W)^T (resident)
                pl.BlockSpec((L_pad, 1), lambda i: (0, 0)),      # bias^T  (resident)
            ],
            out_specs=pl.BlockSpec((1, TB), lambda i: (0, i)),   # lane-dense row
        ),
        compiler_params=pltpu.CompilerParams(
            dimension_semantics=("parallel",),
        ),
        cost_estimate=pl.CostEstimate(
            flops=2 * B_pad * T_pad * V_pad * L_pad,
            transcendentals=B_pad * T_pad * (L_pad + 1),
            bytes_accessed=(2 * B_pad * T_pad * 4      # x, y int32
                            + L_pad * V_pad * 2        # bf16 fused table
                            + L_pad * 4                # bias
                            + B_pad * 4),              # output
        ),
    )(x_t, y_t, ewt, bt)

    return out.reshape(B_pad)[:B]


def labeler_loss(x, y, embed_table, w, b):
    """loss = -1/B * sum_b log P(y[b] | x[b])   (matches Labeler.loss)."""
    log_prob = labeler_log_prob(x, y, embed_table, w, b)   # [B]
    return -jnp.mean(log_prob, axis=0)


if __name__ == "__main__":
    # Module-consistent small config.
    labels = ["outside", "begin", "inside", "end", "bos"]
    classes = ["outside", "begin", "inside", "end"]
    labelset_size = len(labels) + 1        # labels + eos -> 6
    max_seq_len = 8
    label_embed_dim = 32
    vocab_size = 16

    B, T, D, L = 2, max_seq_len, label_embed_dim, labelset_size

    key = jax.random.PRNGKey(0)
    k_emb, k_w, k_x, k_y = jax.random.split(key, 4)

    # Deterministic synthetic parameters (initialize_weights: xavier_uniform Linear, zero bias).
    embed_table = 0.02 * jax.random.normal(k_emb, (vocab_size, D), dtype=jnp.float32)
    bound = math.sqrt(6.0 / (D + L))
    w = jax.random.uniform(k_w, (D, L), minval=-bound, maxval=bound, dtype=jnp.float32)
    b = jnp.zeros((L,), dtype=jnp.float32)

    # Inputs: snippet ids x [B, T], tag ids y [B, T] with pad_id=-1 tail padding.
    x = jax.random.randint(k_x, (B, T), 0, vocab_size, dtype=jnp.int32)
    y = jax.random.randint(k_y, (B, T), 0, len(classes), dtype=jnp.int32)
    time_idx = jnp.arange(T)[None, :]
    seq_lens = jnp.array([T, T - 3], dtype=jnp.int32)[:, None]
    y = jnp.where(time_idx < seq_lens, y, PAD_ID)

    log_prob = labeler_log_prob(x, y, embed_table, w, b)
    loss = labeler_loss(x, y, embed_table, w, b)
    jax.block_until_ready((log_prob, loss))

    # Pure-JAX reference (same parameter path: fused E@W rounded to bf16, f32 bias).
    ew_ref = (embed_table @ w).astype(jnp.bfloat16).astype(jnp.float32)   # (V, L)
    logits = jnp.take(ew_ref, x, axis=0) + b                              # (B, T, L)
    logp = jax.nn.log_softmax(logits, axis=-1)
    valid = y != PAD_ID
    y_safe = jnp.where(valid, y, 0)
    tok = jnp.take_along_axis(logp, y_safe[..., None], axis=-1)[..., 0]
    ref_lp = jnp.sum(jnp.where(valid, tok, 0.0), axis=-1)
    ref_loss = -jnp.mean(ref_lp)

    assert jnp.allclose(log_prob, ref_lp, atol=2e-3, rtol=1e-3), (log_prob, ref_lp)
    assert jnp.allclose(loss, ref_loss, atol=2e-3, rtol=1e-3), (loss, ref_loss)

    print("KERNEL_OK")
</pallas_src>

<mosaic_0001>
module attributes {stable_mosaic.version = 11 : i64} {
  func.func @_labeler_logprob_kernel(%arg0: i32, %arg1: memref<8x128xi32, #tpu.memory_space<vmem>>, %arg2: memref<8x128xi32, #tpu.memory_space<vmem>>, %arg3: memref<8x16xbf16, #tpu.memory_space<vmem>>, %arg4: memref<8x1xf32, #tpu.memory_space<vmem>>, %arg5: memref<1x128xf32, #tpu.memory_space<vmem>>) attributes {dimension_semantics = [#tpu.dimension_semantics<parallel>], iteration_bounds = array<i64: 1>, scalar_prefetch = 0 : i64, scratch_operands = 0 : i64, tpu.core_type = #tpu.core_type<tc>, window_params = [{transform_indices = @transform_0, window_bounds = array<i64: 8, 128>}, {transform_indices = @transform_1, window_bounds = array<i64: 8, 128>}, {pipeline_mode = #tpu.pipeline_mode<synchronous>, transform_indices = @transform_2, window_bounds = array<i64: 8, 16>}, {pipeline_mode = #tpu.pipeline_mode<synchronous>, transform_indices = @transform_3, window_bounds = array<i64: 8, 1>}, {transform_indices = @transform_4, window_bounds = array<i64: 1, 128>}]} {
    %c0 = arith.constant 0 : index
    %c0_0 = arith.constant 0 : index
    %0 = vector.load %arg1[%c0, %c0_0] : memref<8x128xi32, #tpu.memory_space<vmem>>, vector<8x128xi32>
    %1 = vector.shape_cast %0 : vector<8x128xi32> to vector<1x1024xi32>
    %2 = tpu.iota {dimensions = array<i32: 0>} : vector<16x1024xi32>
    %3 = vector.broadcast %1 : vector<1x1024xi32> to vector<16x1024xi32>
    %4 = arith.cmpi eq, %3, %2 : vector<16x1024xi32>
    %5 = arith.extui %4 : vector<16x1024xi1> to vector<16x1024xi32>
    %6 = arith.sitofp %5 : vector<16x1024xi32> to vector<16x1024xf32>
    %7 = arith.truncf %6 : vector<16x1024xf32> to vector<16x1024xbf16>
    %c0_1 = arith.constant 0 : index
    %c0_2 = arith.constant 0 : index
    %8 = vector.load %arg3[%c0_1, %c0_2] : memref<8x16xbf16, #tpu.memory_space<vmem>>, vector<8x16xbf16>
    %cst = arith.constant dense<0.000000e+00> : vector<8x1024xf32>
    %9 = tpu.matmul %8, %7, %cst {dimension_numbers = #tpu.dot_dimension_numbers<[1], [0], [0], [1], [0, 0, 1, 1], [], []>} : vector<8x16xbf16>, vector<16x1024xbf16>, vector<8x1024xf32> -> vector<8x1024xf32>
    %c0_3 = arith.constant 0 : index
    %c0_4 = arith.constant 0 : index
    %10 = vector.load %arg4[%c0_3, %c0_4] : memref<8x1xf32, #tpu.memory_space<vmem>>, vector<8x1xf32>
    %11 = vector.broadcast %10 : vector<8x1xf32> to vector<8x1024xf32>
    %12 = arith.addf %9, %11 : vector<8x1024xf32>
    %cst_5 = arith.constant dense<0xFF800000> : vector<1024xf32>
    %13 = vector.multi_reduction <maximumf>, %12, %cst_5 [0] : vector<8x1024xf32> to vector<1024xf32>
    %14 = vector.shape_cast %13 : vector<1024xf32> to vector<1x1024xf32>
    %15 = vector.broadcast %14 : vector<1x1024xf32> to vector<8x1024xf32>
    %16 = arith.subf %12, %15 : vector<8x1024xf32>
    %17 = math.exp %16 : vector<8x1024xf32>
    %cst_6 = arith.constant dense<0.000000e+00> : vector<1024xf32>
    %18 = vector.multi_reduction <add>, %17, %cst_6 [0] : vector<8x1024xf32> to vector<1024xf32>
    %19 = vector.shape_cast %18 : vector<1024xf32> to vector<1x1024xf32>
    %20 = math.log %19 : vector<1x1024xf32>
    %21 = arith.addf %14, %20 : vector<1x1024xf32>
    %c0_7 = arith.constant 0 : index
    %c0_8 = arith.constant 0 : index
    %22 = vector.load %arg2[%c0_7, %c0_8] : memref<8x128xi32, #tpu.memory_space<vmem>>, vector<8x128xi32>
    %23 = vector.shape_cast %22 : vector<8x128xi32> to vector<1x1024xi32>
    %c-1_i32 = arith.constant -1 : i32
    %24 = vector.broadcast %c-1_i32 : i32 to vector<1x1024xi32>
    %25 = arith.cmpi ne, %23, %24 : vector<1x1024xi32>
    %c0_i32 = arith.constant 0 : i32
    %26 = vector.broadcast %c0_i32 : i32 to vector<1x1024xi32>
    %27 = arith.select %25, %23, %26 : vector<1x1024xi1>, vector<1x1024xi32>
    %28 = tpu.iota {dimensions = array<i32: 0>} : vector<8x1024xi32>
    %29 = vector.broadcast %27 : vector<1x1024xi32> to vector<8x1024xi32>
    %30 = arith.cmpi eq, %29, %28 : vector<8x1024xi32>
    %cst_9 = arith.constant 0.000000e+00 : f32
    %31 = vector.broadcast %cst_9 : f32 to vector<8x1024xf32>
    %32 = arith.select %30, %12, %31 : vector<8x1024xi1>, vector<8x1024xf32>
    %cst_10 = arith.constant dense<0.000000e+00> : vector<1024xf32>
    %33 = vector.multi_reduction <add>, %32, %cst_10 [0] : vector<8x1024xf32> to vector<1024xf32>
    %34 = vector.shape_cast %33 : vector<1024xf32> to vector<1x1024xf32>
    %35 = arith.subf %34, %21 : vector<1x1024xf32>
    %cst_11 = arith.constant 0.000000e+00 : f32
    %36 = vector.broadcast %cst_11 : f32 to vector<1x1024xf32>
    %37 = arith.select %25, %35, %36 : vector<1x1024xi1>, vector<1x1024xf32>
    %38 = vector.shape_cast %37 : vector<1x1024xf32> to vector<8x128xf32>
    %cst_12 = arith.constant dense<0.000000e+00> : vector<128xf32>
    %39 = vector.multi_reduction <add>, %38, %cst_12 [0] : vector<8x128xf32> to vector<128xf32>
    %40 = vector.shape_cast %39 : vector<128xf32> to vector<1x128xf32>
    %c0_13 = arith.constant 0 : index
    %c0_14 = arith.constant 0 : index
    %41 = vector.load %arg5[%c0_13, %c0_14] : memref<1x128xf32, #tpu.memory_space<vmem>>, vector<1x128xf32>
    tpu.vector_store %arg5[%c0_13, %c0_14], %40 {strides = array<i32>} : memref<1x128xf32, #tpu.memory_space<vmem>>, vector<1x128xf32>,
    return
  }
  func.func @transform_0(%arg0: i32) -> (i32, i32) {
    %c0_i32 = arith.constant 0 : i32
    %c0_i32_0 = arith.constant 0 : i32
    return %arg0, %c0_i32 : i32, i32
  }
  func.func @transform_1(%arg0: i32) -> (i32, i32) {
    %c0_i32 = arith.constant 0 : i32
    %c0_i32_0 = arith.constant 0 : i32
    return %arg0, %c0_i32 : i32, i32
  }
  func.func @transform_2(%arg0: i32) -> (i32, i32) {
    %c0_i32 = arith.constant 0 : i32
    %c0_i32_0 = arith.constant 0 : i32
    %c0_i32_1 = arith.constant 0 : i32
    return %c0_i32, %c0_i32_0 : i32, i32
  }
  func.func @transform_3(%arg0: i32) -> (i32, i32) {
    %c0_i32 = arith.constant 0 : i32
    %c0_i32_0 = arith.constant 0 : i32
    %c0_i32_1 = arith.constant 0 : i32
    return %c0_i32, %c0_i32_0 : i32, i32
  }
  func.func @transform_4(%arg0: i32) -> (i32, i32) {
    %c0_i32 = arith.constant 0 : i32
    %c0_i32_0 = arith.constant 0 : i32
    return %c0_i32, %arg0 : i32, i32
  }
}

</mosaic_0001>

<bundles_post_ra>
// kernel: tpu_custom_call.1
= control target key start
LH: loop header
LB: loop body
LE: loop exit
PB: predicated region body
PF: predicated region fallthrough
CT: control target
= control target key end

     0   :  { %9 = vsyncpa [#allocation3], 0  ;;  %s1106_s0 = inlined_call_operand.vmem [shape: s32[8,128], index: 0, kind: input, shape index: {}]   ;;  %s1107_s1 = inlined_call_operand.hbm [shape: s32[8,128], index: 1, kind: input, shape index: {}]   ;;  %s1108_s2 = inlined_call_operand.vmem [shape: bf16[8,16], index: 2, kind: input, shape index: {}]   ;;  %s1109_s3 = inlined_call_operand.vmem [shape: f32[8,1], index: 3, kind: input, shape index: {}]   ;;  %s1110_s4 = inlined_call_operand.hbm [shape: f32[1,128], index: 4, kind: output, shape index: {}]  }
   0x1   :  { %10 = vsyncpa [#allocation4], 0  ;;  %s804_s15 = smov [#allocation2]  }
   0x2   :  { %s19_s16 = sshll.u32 %s804_s15, 4  ;;  %s20_s16 = int_to_ptr.vmem [resolvable:$true] %s19_s16 }
   0x3   :  { %s768_s17 = scalar_lea.vmem %s20_s16, 128  ;;  %p773_p1 = scmp.lt.s32.totalorder %s20_s16, %s20_s16 }
   0x4   :  { %p769_p0 = scmp.ne.s32.totalorder %s20_s16, %s768_s17  ;;  %p774_p2 = scmp.lt.s32.totalorder %s768_s17, %s768_s17 }
   0x6   :  { %p775_p3 = por %p774_p2, %p773_p1 }
   0x8   :  { %p776_p4 = pnand %p775_p3, %p769_p0 }
   0xa   :  { %779 = shalt.err (!%p776_p4)
}
   0xb   :  { %22 = dma.hbm_to_vmem [thread:$0]  %s1107_s1, 128, %s20_s16, [#allocation3]  }
   0xc   :  { %800 = dma.done.wait [#allocation3], 128  }
   0xd   :  { %801 = vsyncadd [#allocation3], 4294967168  ;;  %v46_v0 = vlaneseq  ;;  %v805_v1 = vmov 0   ;;  %v679_v5 = vld [vmem:[%s1106_s0 + $0x1] ss:$8 sm:$0x1] }
   0xe   :  { %180 = vmatprep.mubr.bf16.mxu0 %v805_v1  ;;  %221 = vmatprep.mubr.bf16.mxu1 %v805_v1  ;;  %v681_v6 = vld [vmem:[%s1106_s0 + $0x3] ss:$8 sm:$0x1]  ;;  %v31_v9 = vld [vmem:[%s1106_s0] ss:$8 sm:$0x1] }
   0xf   :  { %v837_v2 = vshrl.u32 %v46_v0, 7  ;;  %727 = vset.pattern.permute.xlu0 %v805_v1  ;;  %v680_v10 = vld [vmem:[%s1106_s0 + $0x2] ss:$8 sm:$0x1]  ;;  %v806_v18 = vmov 1.0|1.0  }
  0x10   :  { %v683_v13 = vld [vmem:[%s1106_s0 + $0x5] ss:$8 sm:$0x1]  ;;  %v685_v15 = vld [vmem:[%s1106_s0 + $0x7] ss:$8 sm:$0x1] }
  0x11   :  { %v840_v3 = vsub.s32 0, %v837_v2  ;;  %v48_v4 = vadd.s32 8, %v837_v2  ;;  %v138_v14 = vld [vmem:[%s1109_s3] sm:$0xff]  ;;  %vm144_vm11 = vcmask 130048  }
  0x12   :  { %v682_v16 = vld [vmem:[%s1106_s0 + $0x4] ss:$8 sm:$0x1]  ;;  %141 = vperm.xlu0 %727, %v138_v14   ;;  %v684_v17 = vld [vmem:[%s1106_s0 + $0x6] ss:$8 sm:$0x1] }
  0x13   :  { %v56_v7 = vrot.slane %v679_v5, %v840_v3  ;;  %v64_v8 = vrot.slane %v681_v6, %v840_v3  ;;  %v52_v11 = vrot.slane %v31_v9, %v840_v3  ;;  %v60_v12 = vrot.slane %v680_v10, %v840_v3  ;;  %v137_v23 = vld [vmem:[%s1108_s2] sm:$0xf]  ;;  %s808_s0 = smov [#allocation5]  }
  0x14   :  { %v72_v19 = vrot.slane %v683_v13, %v840_v3  ;;  %v80_v20 = vrot.slane %v685_v15, %v840_v3  ;;  %v68_v21 = vrot.slane %v682_v16, %v840_v3  ;;  %v76_v22 = vrot.slane %v684_v17, %v840_v3  ;;  %s670_s2 = sshll.u32 %s808_s0, 4  ;;  %s671_s2 = int_to_ptr.vmem [resolvable:$true] %s670_s2 }
  0x15   :  { %vm82_vm0 = vcmp.eq.s32.totalorder %v56_v7, %v837_v2  ;;  %vm90_vm1 = vcmp.eq.s32.totalorder %v56_v7, %v48_v4  ;;  %vm84_vm2 = vcmp.eq.s32.totalorder %v64_v8, %v837_v2  ;;  %vm92_vm3 = vcmp.eq.s32.totalorder %v64_v8, %v48_v4  ;;  %s780_s12 = scalar_lea.vmem %s671_s2, 16  ;;  %s784_s13 = scalar_lea.vmem %s671_s2, 32 }
  0x16   :  { %vm702_vm4 = vmpackc.low %vm90_vm1, %vm82_vm0  ;;  %vm81_vm5 = vcmp.eq.s32.totalorder %v52_v11, %v837_v2  ;;  %vm89_vm6 = vcmp.eq.s32.totalorder %v52_v11, %v48_v4  ;;  %vm83_vm7 = vcmp.eq.s32.totalorder %v60_v12, %v837_v2  ;;  %vm91_vm8 = vcmp.eq.s32.totalorder %v60_v12, %v48_v4  ;;  %p781_p5 = scmp.ne.s32.totalorder %s671_s2, %s780_s12  ;;  %p785_p6 = scmp.lt.s32.totalorder %s671_s2, %s671_s2 }
  0x17   :  { %703 = vmatprep.subr.msk.bf16.mxu0 %vm702_vm4, %v806_v18  ;;  %vm707_vm9 = vmpackc.low %vm92_vm3, %vm84_vm2  ;;  %vm86_vm13 = vcmp.eq.s32.totalorder %v72_v19, %v837_v2  ;;  %vm94_vm14 = vcmp.eq.s32.totalorder %v72_v19, %v48_v4  ;;  %vm88_vm15 = vcmp.eq.s32.totalorder %v80_v20, %v837_v2  ;;  %vm96_vm0 = vcmp.eq.s32.totalorder %v80_v20, %v48_v4  ;;  %p786_p7 = scmp.lt.s32.totalorder %s784_s13, %s780_s12 }
  0x18   :  { %708 = vmatprep.subr.msk.bf16.mxu1 %vm707_vm9, %v806_v18  ;;  %vm704_vm10 = vmpackc.low %vm89_vm6, %vm81_vm5  ;;  %vm85_vm2 = vcmp.eq.s32.totalorder %v68_v21, %v837_v2  ;;  %vm93_vm3 = vcmp.eq.s32.totalorder %v68_v21, %v48_v4  ;;  %vm87_vm4 = vcmp.eq.s32.totalorder %v76_v22, %v837_v2  ;;  %vm95_vm5 = vcmp.eq.s32.totalorder %v76_v22, %v48_v4 }
  0x19   :  { %705 = vmatpush1.bf16.msk.msra.mxu0 %vm704_vm10, %v806_v18  ;;  %vm709_vm12 = vmpackc.low %vm91_vm8, %vm83_vm7  ;;  %p787_p8 = por %p786_p7, %p785_p6 }
  0x1a   :  { %710 = vmatpush1.bf16.msk.msra.mxu1 %vm709_vm12, %v806_v18  ;;  %vm712_vm1 = vmpackc.low %vm94_vm14, %vm86_vm13 }
  0x1b   :  { %713 = vmatprep.subr.msk.bf16.mxu0 %vm712_vm1, %v806_v18  ;;  %vm717_vm6 = vmpackc.low %vm96_vm0, %vm88_vm15  ;;  %p788_p9 = pnand %p787_p8, %p781_p5 }
  0x1c   :  { %706 = vmatmul.mubr.msk.bf16.vlgmr.msra.gmra.mxu0 %vm144_vm11, %v137_v23  ;;  %718 = vmatprep.subr.msk.bf16.mxu1 %vm717_vm6, %v806_v18  ;;  %vm714_vm7 = vmpackc.low %vm93_vm3, %vm85_vm2 }
  0x1d   :  { %711 = vmatmul.mubr.msk.bf16.vlgmr.msra.gmra.mxu1 %vm144_vm11, %v137_v23  ;;  %715 = vmatpush1.bf16.msk.msra.mxu0 %vm714_vm7, %v806_v18  ;;  %vm719_vm8 = vmpackc.low %vm95_vm5, %vm87_vm4 }
  0x1e   :  { %720 = vmatpush1.bf16.msk.msra.mxu1 %vm719_vm8, %v806_v18  ;;  %262 = vmatprep.mubr.bf16.mxu0 %v805_v1 }
  0x1f   :  { %303 = vmatprep.mubr.bf16.mxu1 %v805_v1 }
  0x24   :  { %716 = vmatmul.mubr.msk.bf16.vlgmr.msra.gmra.mxu0 %vm144_vm11, %v137_v23 }
  0x25   :  { %721 = vmatmul.mubr.msk.bf16.vlgmr.msra.gmra.mxu1 %vm144_vm11, %v137_v23 }
  0x8d   :  { %v893_v24 = vpop.permute.xlu0 %141 }
  0xdc   :  { %v182_v25 = vpop.f32.mrf.mxu0 }
  0xdd   :  { %v896_v26 = vadd.f32 %v182_v25, %v893_v24  ;;  %v223_v27 = vpop.f32.mrf.mxu1 }
  0xde   :  { %v899_v28 = vadd.f32 %v223_v27, %v893_v24  ;;  %v184_v29 = vpop.f32.mrf.mxu0 }
  0xdf   :  { %v312_v30 = vrot.slane %v896_v26, 4  ;;  %v903_v31 = vadd.f32 %v184_v29, %v893_v24  ;;  %v225_v32 = vpop.f32.mrf.mxu1 }
  0xe0   :  { %v324_v33 = vrot.slane %v899_v28, 4  ;;  %v907_v34 = vadd.f32 %v225_v32, %v893_v24  ;;  %v186_v35 = vpop.f32.mrf.mxu0 }
  0xe1   :  { %v313_v36 = vmax.f32 %v896_v26, %v312_v30  ;;  %v318_v37 = vrot.slane %v903_v31, 4  ;;  %v227_v38 = vpop.f32.mrf.mxu1 }
  0xe2   :  { %v325_v39 = vmax.f32 %v899_v28, %v324_v33  ;;  %v330_v40 = vrot.slane %v907_v34, 4  ;;  %v187_v41 = vpop.f32.mrf.mxu0  ;;  %v950_v33 = vld [vmem:[#allocation2] ss:$8 sm:$0x1] }
  0xe3   :  { %v314_v42 = vrot.slane %v313_v36, 2  ;;  %v319_v43 = vmax.f32 %v903_v31, %v318_v37  ;;  %v228_v44 = vpop.f32.mrf.mxu1  ;;  %vm471_vm9 = vcmp.ne.s32.totalorder %v950_v33, 4294967295 }
  0xe4   :  { %v326_v45 = vrot.slane %v325_v39, 2  ;;  %v331_v46 = vmax.f32 %v907_v34, %v330_v40  ;;  %v264_v47 = vpop.f32.mrf.mxu0 }
  0xe5   :  { %v315_v48 = vmax.f32 %v313_v36, %v314_v42  ;;  %v320_v49 = vrot.slane %v319_v43, 2  ;;  %v305_v50 = vpop.f32.mrf.mxu1  ;;  %v928_v9 = vadd.f32 %v264_v47, %v893_v24 }
  0xe6   :  { %v327_v51 = vmax.f32 %v325_v39, %v326_v45  ;;  %v332_v52 = vrot.slane %v331_v46, 2  ;;  %v266_v53 = vpop.f32.mrf.mxu0  ;;  %v933_v12 = vadd.f32 %v305_v50, %v893_v24  ;;  %v969_v50 = vsel %vm471_vm9, %v950_v33, 0 }
  0xe7   :  { %v316_v54 = vrot.slane %v315_v48, 1  ;;  %v321_v55 = vmax.f32 %v319_v43, %v320_v49  ;;  %v307_v56 = vpop.f32.mrf.mxu1  ;;  %v336_v15 = vrot.slane %v928_v9, 4  ;;  %v941_v20 = vadd.f32 %v266_v53, %v893_v24  ;;  %v958_v43 = vld [vmem:[#allocation2 + $0x1] ss:$8 sm:$0x1] }
  0xe8   :  { %v328_v57 = vrot.slane %v327_v51, 1  ;;  %v333_v58 = vmax.f32 %v331_v46, %v332_v52  ;;  %v268_v59 = vpop.f32.mrf.mxu0  ;;  %v348_v19 = vrot.slane %v933_v12, 4  ;;  %v946_v25 = vadd.f32 %v307_v56, %v893_v24  ;;  %v956_v24 = vld [vmem:[#allocation2 + $0x2] ss:$8 sm:$0x1] }
  0xe9   :  { %v915_v60 = vmax.f32 %v315_v48, %v316_v54  ;;  %v322_v61 = vrot.slane %v321_v55, 1  ;;  %v309_v62 = vpop.f32.mrf.mxu1  ;;  %v337_v18 = vmax.f32 %v928_v9, %v336_v15  ;;  %v342_v23 = vrot.slane %v941_v20, 4  ;;  %v964_v46 = vld [vmem:[#allocation2 + $0x3] ss:$8 sm:$0x1] }
  0xea   :  { %v917_v63 = vmax.f32 %v327_v51, %v328_v57  ;;  %v334_v0 = vrot.slane %v333_v58, 1  ;;  %v269_v1 = vpop.f32.mrf.mxu0  ;;  %v349_v22 = vmax.f32 %v933_v12, %v348_v19  ;;  %v354_v32 = vrot.slane %v946_v25, 4 }
  0xeb   :  { %v360_v4 = vsub.f32 %v896_v26, %v915_v60  ;;  %v921_v5 = vmax.f32 %v321_v55, %v322_v61  ;;  %v310_v6 = vpop.f32.mrf.mxu1  ;;  %v338_v21 = vrot.slane %v337_v18, 2  ;;  %v343_v30 = vmax.f32 %v941_v20, %v342_v23  ;;  %v978_v1 = vld [vmem:[#allocation2 + $0x4] ss:$8 sm:$0x1] }
  0xec   :  { %v362_v7 = vsub.f32 %v899_v28, %v917_v63  ;;  %v925_v8 = vmax.f32 %v333_v58, %v334_v0  ;;  %v350_v29 = vrot.slane %v349_v22, 2  ;;  %v355_v38 = vmax.f32 %v946_v25, %v354_v32 }
  0xed   :  { %v368_v10 = vmul.f32 1.442695, %v360_v4  ;;  %v361_v11 = vsub.f32 %v903_v31, %v921_v5  ;;  %v339_v27 = vmax.f32 %v337_v18, %v338_v21  ;;  %v344_v37 = vrot.slane %v343_v30, 2 }
  0xee   :  { %v372_v13 = vmul.f32 1.442695, %v362_v7  ;;  %v363_v14 = vsub.f32 %v907_v34, %v925_v8  ;;  %v351_v36 = vmax.f32 %v349_v22, %v350_v29  ;;  %v356_v42 = vrot.slane %v355_v38, 2  ;;  %v993_v22 = vld [vmem:[#allocation2 + $0x6] ss:$8 sm:$0x1] }
  0xef   :  { %728 = vpow2.f32 %v368_v10  ;;  %v370_v16 = vmul.f32 1.442695, %v361_v11  ;;  %v340_v35 = vrot.slane %v339_v27, 1  ;;  %v345_v41 = vmax.f32 %v343_v30, %v344_v37 }
  0xf0   :  { %730 = vpow2.f32 %v372_v13  ;;  %v374_v17 = vmul.f32 1.442695, %v363_v14  ;;  %v352_v40 = vrot.slane %v351_v36, 1  ;;  %v357_v48 = vmax.f32 %v355_v38, %v356_v42 }
  0xf1   :  { %732 = vpow2.f32 %v370_v16  ;;  %v953_v39 = vmax.f32 %v339_v27, %v340_v35  ;;  %v346_v47 = vrot.slane %v345_v41, 1  ;;  %vm473_vm10 = vcmp.ne.s32.totalorder %v956_v24, 4294967295  ;;  %v999_v35 = vld [vmem:[#allocation2 + $0x5] ss:$8 sm:$0x1] }
  0xf2   :  { %734 = vpow2.f32 %v374_v17  ;;  %v962_v45 = vmax.f32 %v351_v36, %v352_v40  ;;  %vm472_vm11 = vcmp.ne.s32.totalorder %v958_v43, 4294967295  ;;  %v358_v56 = vrot.slane %v357_v48, 1  ;;  %v1004_v40 = vld [vmem:[#allocation2 + $0x7] ss:$8 sm:$0x1] }
  0xf3   :  { %v364_v44 = vsub.f32 %v928_v9, %v953_v39  ;;  %v975_v55 = vmax.f32 %v345_v41, %v346_v47  ;;  %vm474_vm12 = vcmp.ne.s32.totalorder %v964_v46, 4294967295  ;;  %v480_v10 = vsel %vm472_vm11, %v958_v43, 0 }
  0xf4   :  { %v366_v52 = vsub.f32 %v933_v12, %v962_v45  ;;  %v982_v6 = vmax.f32 %v357_v48, %v358_v56  ;;  %v482_v19 = vsel %vm474_vm12, %v964_v46, 0  ;;  %vm475_vm13 = vcmp.ne.s32.totalorder %v978_v1, 4294967295 }
  0xf5   :  { %v376_v51 = vmul.f32 1.442695, %v364_v44  ;;  %v365_v4 = vsub.f32 %v941_v20, %v975_v55  ;;  %v481_v29 = vsel %vm473_vm10, %v956_v24, 0  ;;  %v494_v30 = vrot.slane %v480_v10, %v840_v3 }
  0xf6   :  { %v380_v59 = vmul.f32 1.442695, %v366_v52  ;;  %v367_v16 = vsub.f32 %v946_v25, %v982_v6  ;;  %v483_v38 = vsel %vm475_vm13, %v978_v1, 0  ;;  %v490_v41 = vrot.slane %v969_v50, %v840_v3 }
  0xf7   :  { %736 = vpow2.f32 %v376_v51  ;;  %v378_v15 = vmul.f32 1.442695, %v365_v4  ;;  %v502_v44 = vrot.slane %v482_v19, %v840_v3  ;;  %v498_v47 = vrot.slane %v481_v29, %v840_v3 }
  0xf8   :  { %738 = vpow2.f32 %v380_v59  ;;  %v382_v23 = vmul.f32 1.442695, %v367_v16  ;;  %vm477_vm14 = vcmp.ne.s32.totalorder %v993_v22, 4294967295  ;;  %vm476_vm15 = vcmp.ne.s32.totalorder %v999_v35, 4294967295 }
  0xf9   :  { %740 = vpow2.f32 %v378_v15  ;;  %v506_v52 = vrot.slane %v483_v38, %v840_v3  ;;  %vm478_vm0 = vcmp.ne.s32.totalorder %v1004_v40, 4294967295  ;;  %vm520_vm1 = vcmp.eq.s32.totalorder %v494_v30, %v837_v2 }
  0xfa   :  { %742 = vpow2.f32 %v382_v23  ;;  %vm522_vm2 = vcmp.eq.s32.totalorder %v502_v44, %v837_v2  ;;  %v484_v56 = vsel %vm476_vm15, %v999_v35, 0  ;;  %vm1023_vm3 = vcmp.eq.s32.totalorder %v490_v41, %v837_v2 }
  0xfb   :  { %vm1028_vm4 = vcmp.eq.s32.totalorder %v498_v47, %v837_v2  ;;  %v528_v4 = vsel %vm520_vm1, %v903_v31, 0.0  ;;  %vm1037_vm5 = vcmp.eq.s32.totalorder %v506_v52, %v837_v2  ;;  %v510_v16 = vrot.slane %v484_v56, %v840_v3 }
  0xfc   :  { %v729_v49 = vpop.eup %728  ;;  %v527_v31 = vsel %vm1023_vm3, %v896_v26, 0.0  ;;  %v541_v23 = vrot.slane %v528_v4, 4  ;;  %v531_v44 = vsel %vm1037_vm5, %v928_v9, 0.0 }
  0xfd   :  { %v731_v53 = vpop.eup %730  ;;  %v384_v54 = vrot.slane %v729_v49, 4  ;;  %vm1057_vm7 = vcmp.eq.s32.totalorder %v510_v16, %v837_v2 }
  0xfe   :  { %v733_v57 = vpop.eup %732  ;;  %v396_v58 = vrot.slane %v731_v53, 4  ;;  %v532_v56 = vsel %vm1057_vm7, %v941_v20, 0.0 }
  0xff   :  { %v735_v61 = vpop.eup %734  ;;  %v385_v62 = vadd.f32 %v729_v49, %v384_v54  ;;  %v390_v0 = vrot.slane %v733_v57, 4  ;;  %v485_v54 = vsel %vm477_vm14, %v993_v22, 0 }
 0x100   :  { %v397_v7 = vadd.f32 %v731_v53, %v396_v58  ;;  %v402_v11 = vrot.slane %v735_v61, 4  ;;  %v514_v15 = vrot.slane %v485_v54, %v840_v3 }
 0x101   :  { %v386_v13 = vrot.slane %v385_v62, 2  ;;  %v391_v14 = vadd.f32 %v733_v57, %v390_v0 }
 0x102   :  { %v398_v17 = vrot.slane %v397_v7, 2  ;;  %v403_v18 = vadd.f32 %v735_v61, %v402_v11  ;;  %vm1052_vm6 = vcmp.eq.s32.totalorder %v514_v15, %v837_v2 }
 0x103   :  { %v392_v21 = vrot.slane %v391_v14, 2  ;;  %v387_v27 = vadd.f32 %v386_v13, %v385_v62  ;;  %v486_v62 = vsel %vm478_vm0, %v1004_v40, 0 }
 0x104   :  { %v404_v32 = vrot.slane %v403_v18, 2  ;;  %v399_v36 = vadd.f32 %v398_v17, %v397_v7  ;;  %v737_v57 = vpop.eup %736  ;;  %v518_v19 = vrot.slane %v486_v62, %v840_v3 }
 0x105   :  { %v393_v37 = vadd.f32 %v392_v21, %v391_v14  ;;  %v388_v49 = vrot.slane %v387_v27, 1  ;;  %v408_v7 = vrot.slane %v737_v57, 4  ;;  %v739_v11 = vpop.eup %738  ;;  %v530_v14 = vsel %vm522_vm2, %v907_v34, 0.0 }
 0x106   :  { %v405_v42 = vadd.f32 %v404_v32, %v403_v18  ;;  %v400_v53 = vrot.slane %v399_v36, 1  ;;  %v420_v18 = vrot.slane %v739_v11, 4  ;;  %v529_v21 = vsel %vm1028_vm4, %v899_v28, 0.0  ;;  %v741_v34 = vpop.eup %740 }
 0x107   :  { %v394_v48 = vrot.slane %v393_v37, 1  ;;  %v389_v0 = vadd.f32 %v388_v49, %v387_v27  ;;  %v409_v17 = vadd.f32 %v737_v57, %v408_v7  ;;  %v553_v27 = vrot.slane %v530_v14, 4  ;;  %v743_v28 = vpop.eup %742 }
 0x108   :  { %v406_v51 = vrot.slane %v405_v42, 1  ;;  %v401_v13 = vadd.f32 %v400_v53, %v399_v36  ;;  %v421_v30 = vadd.f32 %v739_v11, %v420_v18  ;;  %v414_v3 = vrot.slane %v741_v34, 4 }
 0x109   :  { %v395_v50 = vadd.f32 %v394_v48, %v393_v37  ;;  %v410_v29 = vrot.slane %v409_v17, 2  ;;  %v535_v36 = vrot.slane %v527_v31, 4  ;;  %vm1062_vm8 = vcmp.eq.s32.totalorder %v518_v19, %v837_v2 }
 0x10a   :  { %v407_v61 = vadd.f32 %v406_v51, %v405_v42  ;;  %v422_v38 = vrot.slane %v421_v30, 2  ;;  %v547_v42 = vrot.slane %v529_v21, 4  ;;  %v415_v47 = vadd.f32 %v741_v34, %v414_v3 }
 0x10b   :  { %744 = vlog2.f32 %v395_v50  ;;  %v411_v37 = vadd.f32 %v410_v29, %v409_v17  ;;  %v426_v48 = vrot.slane %v743_v28, 4  ;;  %v542_v49 = vadd.f32 %v541_v23, %v528_v4 }
 0x10c   :  { %746 = vlog2.f32 %v407_v61  ;;  %v554_v51 = vadd.f32 %v553_v27, %v530_v14  ;;  %v423_v53 = vadd.f32 %v422_v38, %v421_v30  ;;  %v533_v50 = vsel %vm1052_vm6, %v933_v12, 0.0 }
 0x10d   :  { %748 = vlog2.f32 %v389_v0  ;;  %v412_v52 = vrot.slane %v411_v37, 1  ;;  %v416_v54 = vrot.slane %v415_v47, 2  ;;  %v427_v57 = vadd.f32 %v743_v28, %v426_v48 }
 0x10e   :  { %750 = vlog2.f32 %v401_v13  ;;  %v536_v58 = vadd.f32 %v535_v36, %v527_v31  ;;  %v559_v61 = vrot.slane %v531_v44, 4  ;;  %v424_v9 = vrot.slane %v423_v53, 1 }
 0x10f   :  { %v413_v59 = vadd.f32 %v412_v52, %v411_v37  ;;  %v548_v62 = vadd.f32 %v547_v42, %v529_v21  ;;  %v417_v0 = vadd.f32 %v416_v54, %v415_v47  ;;  %v428_v4 = vrot.slane %v427_v57, 2 }
 0x110   :  { %v534_v7 = vsel %vm1062_vm8, %v946_v25, 0.0  ;;  %v425_v10 = vadd.f32 %v424_v9, %v423_v53  ;;  %v571_v12 = vrot.slane %v533_v50, 4  ;;  %v565_v11 = vrot.slane %v532_v56, 4 }
 0x111   :  { %752 = vlog2.f32 %v413_v59  ;;  %v543_v13 = vrot.slane %v542_v49, 2  ;;  %v555_v14 = vrot.slane %v554_v51, 2  ;;  %v418_v15 = vrot.slane %v417_v0, 1 }
 0x112   :  { %v429_v20 = vadd.f32 %v428_v4, %v427_v57  ;;  %v537_v16 = vrot.slane %v536_v58, 2  ;;  %v560_v17 = vadd.f32 %v559_v61, %v531_v44  ;;  %754 = vlog2.f32 %v425_v10 }
 0x113   :  { %v577_v18 = vrot.slane %v534_v7, 4  ;;  %v549_v31 = vrot.slane %v548_v62, 2  ;;  %v419_v21 = vadd.f32 %v418_v15, %v417_v0  ;;  %v572_v27 = vadd.f32 %v571_v12, %v533_v50 }
 0x114   :  { %v430_v23 = vrot.slane %v429_v20, 1  ;;  %v566_v29 = vadd.f32 %v565_v11, %v532_v56  ;;  %v544_v30 = vadd.f32 %v543_v13, %v542_v49  ;;  %v556_v32 = vadd.f32 %v555_v14, %v554_v51 }
 0x115   :  { %756 = vlog2.f32 %v419_v21  ;;  %v538_v28 = vadd.f32 %v537_v16, %v536_v58  ;;  %v561_v36 = vrot.slane %v560_v17, 2  ;;  %v578_v37 = vadd.f32 %v577_v18, %v534_v7 }
 0x116   :  { %v431_v3 = vadd.f32 %v430_v23, %v429_v20  ;;  %v550_v38 = vadd.f32 %v549_v31, %v548_v62  ;;  %v573_v47 = vrot.slane %v572_v27, 2  ;;  %v567_v48 = vrot.slane %v566_v29, 2 }
 0x117   :  { %v545_v53 = vrot.slane %v544_v30, 1  ;;  %v557_v50 = vrot.slane %v556_v32, 1  ;;  %v539_v54 = vrot.slane %v538_v28, 1  ;;  %v562_v56 = vadd.f32 %v561_v36, %v560_v17 }
 0x118   :  { %v745_v19 = vpop.eup %744  ;;  %758 = vlog2.f32 %v431_v3  ;;  %v579_v49 = vrot.slane %v578_v37, 2  ;;  %v551_v51 = vrot.slane %v550_v38, 1  ;;  %v574_v61 = vadd.f32 %v573_v47, %v572_v27 }
 0x119   :  { %v747_v34 = vpop.eup %746  ;;  %v435_v41 = vmul.f32 0.6931472, %v745_v19  ;;  %v568_v9 = vadd.f32 %v567_v48, %v566_v29  ;;  %v546_v4 = vadd.f32 %v545_v53, %v544_v30  ;;  %v558_v7 = vadd.f32 %v557_v50, %v556_v32 }
 0x11a   :  { %v749_v25 = vpop.eup %748  ;;  %v439_v42 = vmul.f32 0.6931472, %v747_v34  ;;  %v807_v10 = vmov 1966171168   ;;  %v540_v11 = vadd.f32 %v539_v54, %v538_v28  ;;  %v563_v14 = vrot.slane %v562_v56, 1 }
 0x11b   :  { %v751_v26 = vpop.eup %750  ;;  %v433_v44 = vmul.f32 0.6931472, %v749_v25  ;;  %v449_v57 = vadd.f32 %v435_v41, %v921_v5  ;;  %v612_v12 = vunpack.c.l.s4 %v807_v10  ;;  %v580_v15 = vadd.f32 %v579_v49, %v578_v37 }
 0x11c   :  { %v437_v52 = vmul.f32 0.6931472, %v751_v26  ;;  %v451_v58 = vadd.f32 %v439_v42, %v925_v8  ;;  %v552_v16 = vadd.f32 %v551_v51, %v550_v38  ;;  %v569_v19 = vrot.slane %v568_v9, 1 }
 0x11d   :  { %v448_v59 = vadd.f32 %v433_v44, %v915_v60  ;;  %v584_v5 = vsub.f32 %v546_v4, %v449_v57  ;;  %v575_v60 = vrot.slane %v574_v61, 1  ;;  %v564_v23 = vadd.f32 %v563_v14, %v562_v56 }
 0x11e   :  { %v753_v62 = vpop.eup %752  ;;  %v450_v0 = vadd.f32 %v437_v52, %v917_v63  ;;  %v586_v17 = vsub.f32 %v558_v7, %v451_v58  ;;  %v581_v34 = vrot.slane %v580_v15, 1  ;;  %v613_v27 = vunpack.c.0.s8 %v612_v12 }
 0x11f   :  { %v441_v13 = vmul.f32 0.6931472, %v753_v62  ;;  %v755_v20 = vpop.eup %754  ;;  %v583_v8 = vsub.f32 %v540_v11, %v448_v59  ;;  %v592_v29 = vsel %vm472_vm11, %v584_v5, 0.0  ;;  %v576_v28 = vadd.f32 %v575_v60, %v574_v61 }
 0x120   :  { %v445_v18 = vmul.f32 0.6931472, %v755_v20  ;;  %v585_v31 = vsub.f32 %v552_v16, %v450_v0  ;;  %v594_v25 = vsel %vm474_vm12, %v586_v17, 0.0  ;;  %v570_v36 = vadd.f32 %v569_v19, %v568_v9 }
 0x121   :  { %v452_v21 = vadd.f32 %v441_v13, %v953_v39  ;;  %v591_v26 = vsel %vm471_vm9, %v583_v8, 0.0  ;;  %v616_v46 = vsub.s32 %v613_v27, %v837_v2  ;;  %v582_v48 = vadd.f32 %v581_v34, %v580_v15 }
 0x122   :  { %v757_v63 = vpop.eup %756  ;;  %v454_v30 = vadd.f32 %v445_v18, %v962_v45  ;;  %v593_v39 = vsel %vm473_vm10, %v585_v31, 0.0  ;;  %v607_v41 = vcombine.low %v591_v26, %v592_v29 }
 0x123   :  { %v443_v32 = vmul.f32 0.6931472, %v757_v63  ;;  %v587_v37 = vsub.f32 %v564_v23, %v452_v21  ;;  %v608_v42 = vcombine.low %v593_v39, %v594_v25 }
 0x124   :  { %v589_v44 = vsub.f32 %v576_v28, %v454_v30  ;;  %v617_v50 = vrot.slane %v607_v41, %v616_v46 }
 0x125   :  { %v759_v3 = vpop.eup %758  ;;  %v453_v38 = vadd.f32 %v443_v32, %v975_v55  ;;  %v595_v33 = vsel %vm475_vm13, %v587_v37, 0.0  ;;  %v624_v55 = vrot.slane %v608_v42, %v616_v46 }
 0x126   :  { %v447_v43 = vmul.f32 0.6931472, %v759_v3  ;;  %v597_v54 = vsel %vm477_vm14, %v589_v44, 0.0 }
 0x127   :  { %v588_v45 = vsub.f32 %v570_v36, %v453_v38  ;;  %v639_v51 = vcombine.low %v617_v50, %v624_v55 }
 0x128   :  { %v455_v47 = vadd.f32 %v447_v43, %v982_v6 }
 0x129   :  { %v596_v24 = vsel %vm476_vm15, %v588_v45, 0.0  ;;  %v647_v1 = vrot.slane %v639_v51, %v616_v46 }
 0x12a   :  { %v590_v52 = vsub.f32 %v582_v48, %v455_v47  ;;  %v609_v53 = vcombine.low %v595_v33, %v596_v24 }
 0x12c   :  { %v598_v2 = vsel %vm478_vm0, %v590_v52, 0.0  ;;  %v631_v49 = vrot.slane %v609_v53, %v616_v46 }
 0x12d   :  { %v610_v56 = vcombine.low %v597_v54, %v598_v2 }
 0x12f   :  { %v638_v6 = vrot.slane %v610_v56, %v616_v46 }
 0x131   :  { %v640_v57 = vcombine.low %v631_v49, %v638_v6 }
 0x133   :  { %v654_v58 = vrot.slane %v640_v57, %v616_v46 }
 0x135   :  { %v655_v59 = vcombine.low %v647_v1, %v654_v58 }
 0x137   :  { %v657_v35 = vrot.slane %v655_v59, 4 }
 0x139   :  { %v658_v61 = vadd.f32 %v657_v35, %v655_v59 }
 0x13b   :  { %v659_v9 = vrot.slane %v658_v61, 2 }
 0x13d   :  { %v660_v62 = vadd.f32 %v659_v9, %v658_v61 }
 0x13f   :  { %v661_v0 = vrot.slane %v660_v62, 1 }
 0x141   :  { %v662_v22 = vadd.f32 %v661_v0, %v660_v62 }
 0x143   :  { %663 = vst [vmem:[#allocation5] sm:$0x1] %v662_v22 }
 0x144   :  { %791 = shalt.err (!%p788_p9)
}
 0x145   :  { %673 = dma.vmem_to_hbm [thread:$0]  %s671_s2, 16, %s1110_s4, [#allocation4]  }
 0x146   :  { %802 = dma.done.wait [#allocation4], 16  }
 0x147   :  { %803 = vsyncadd [#allocation4], 4294967280 }
 0x148   :  { %677 = vsyncpa [#allocation3], 1 }
 0x149   :  { %678 = vsyncpa [#allocation4], 1 }

</bundles_post_ra>
